<compile_context>
chip_gen: v6e
topology: v6e:2x2x1
jax: 0.10.0
libtpu: 0.0.40
codegen_flags: <defaults>
</compile_context>

<pallas_src>
import functools

import jax
import jax.numpy as jnp
from jax.experimental import pallas as pl
from jax.experimental.pallas import tpu as pltpu


def _round_up(x, m):
    return (x + m - 1) // m * m


def _cdiv(a, b):
    return -(-a // b)


def _near_divisor_tile(dim, max_tile, align):
    """Largest tile <= max_tile that nearly divides `dim` (minimal ragged waste)."""
    max_tile = max(align, min(max_tile, _round_up(dim, align)))
    n_tiles = _cdiv(dim, max_tile)
    tile = _round_up(_cdiv(dim, n_tiles), align)
    return tile, _cdiv(dim, tile)


def _mlp_kernel(x_ref, w_ref, b_ref, o_ref, *, leaky, compute_dtype):
    # x_ref: (TM, K)   native input dtype (cast in-kernel, not in the wrapper)
    # w_ref: (K, TN)   compute dtype (VMEM-resident when N is a single block)
    # b_ref: (1, TN)   f32
    # o_ref: (TM, TN)  out dtype
    x = x_ref[...].astype(compute_dtype)
    y = jnp.dot(x, w_ref[...], preferred_element_type=jnp.float32)
    y = y + b_ref[...]
    if leaky:
        # LeakyReLU(negative_slope=0.1), applied on the f32 accumulator.
        y = jnp.where(y >= 0, y, 0.1 * y)
    o_ref[...] = y.astype(o_ref.dtype)


def mlp_forward(x, weight, bias, identity=False, *,
                compute_dtype=None, out_dtype=None,
                tm_max=512, tn_max=512,
                vmem_target_bytes=20 * 1024 * 1024):
    """x: (B, S, n_in); weight: (n_hidden, n_in) [PyTorch layout]; bias: (n_hidden,).

    compute_dtype=None -> use x.dtype (exact parity with the PyTorch module).
    Pass compute_dtype=jnp.bfloat16 for the fast MXU path (f32 accumulation).
    """
    B, S, n_in = x.shape
    n_hidden = weight.shape[0]
    M = B * S

    compute_dtype = jnp.dtype(compute_dtype if compute_dtype is not None else x.dtype)
    out_dtype = jnp.dtype(out_dtype if out_dtype is not None else x.dtype)

    x_bytes = jnp.dtype(x.dtype).itemsize
    c_bytes = compute_dtype.itemsize
    o_bytes = out_dtype.itemsize

    # Free (metadata-only) flatten of the leading batch/seq dims; no cast/pad.
    x2d = x.reshape(M, n_in)
    # One-time tiny wrapper pass over the *weight* only: (n_hidden, n_in) ->
    # (n_in, n_hidden), cast once to the MXU compute dtype.
    w2d = weight.T.astype(compute_dtype)
    b2d = bias.reshape(1, n_hidden).astype(jnp.float32)

    # ---- Tile selection -------------------------------------------------
    # Guarantee >=2 M tiles when there is enough work (v7x: 2 TensorCores),
    # while keeping each tile >=64 rows so per-step overhead stays negligible.
    tm_cap = min(tm_max, max(64, _round_up(_cdiv(M, 2), 16)))
    tn_cap = tn_max
    # Keep the whole weight VMEM-resident (single N block) whenever it's small.
    single_n = (2 * n_in * n_hidden * c_bytes) <= (8 * 1024 * 1024)

    while True:
        TM, grid_m = _near_divisor_tile(M, tm_cap, 16)
        if single_n:
            TN, grid_n = n_hidden, 1
        else:
            TN, grid_n = _near_divisor_tile(n_hidden, tn_cap, 128)
        # Double-buffered BlockSpec buffers + in-kernel temporaries.
        footprint = (2 * TM * n_in * x_bytes        # x tiles
                     + 2 * n_in * TN * c_bytes      # weight tile(s)
                     + 2 * 8 * TN * 4               # bias (sublane-padded)
                     + 2 * TM * TN * o_bytes        # output tiles
                     + TM * n_in * c_bytes          # casted x copy
                     + 2 * TM * TN * 4)             # f32 accumulator temps
        if footprint <= vmem_target_bytes:
            break
        if tm_cap > 64:
            tm_cap = max(64, tm_cap // 2)
        elif single_n:
            single_n = False
        elif tn_cap > 128:
            tn_cap = max(128, tn_cap // 2)
        else:
            break  # as small as we can go; vmem_limit below has headroom

    vmem_limit = int(min(64 * 1024 * 1024,
                         max(footprint + 8 * 1024 * 1024, 16 * 1024 * 1024)))

    cost = pl.CostEstimate(
        flops=2 * M * n_in * n_hidden + 2 * M * n_hidden,
        transcendentals=0,
        bytes_accessed=(M * n_in * x_bytes + n_in * n_hidden * c_bytes
                        + n_hidden * 4 + M * n_hidden * o_bytes),
    )

    kernel = functools.partial(_mlp_kernel, leaky=not identity,
                               compute_dtype=compute_dtype)

    # Grid: M outer, N inner -> the x tile's block index only changes on the
    # outer axis, so Pallas keeps it resident across all N steps (no re-DMA);
    # the (smaller) weight/bias tiles are the ones re-streamed.
    out2d = pl.pallas_call(
        kernel,
        out_shape=jax.ShapeDtypeStruct((M, n_hidden), out_dtype),
        grid=(grid_m, grid_n),
        in_specs=[
            pl.BlockSpec((TM, n_in), lambda i, j: (i, 0)),   # x: outer axis only
            pl.BlockSpec((n_in, TN), lambda i, j: (0, j)),   # W^T
            pl.BlockSpec((1, TN), lambda i, j: (0, j)),      # bias
        ],
        out_specs=pl.BlockSpec((TM, TN), lambda i, j: (i, j)),
        compiler_params=pltpu.CompilerParams(
            dimension_semantics=("parallel", "parallel"),
            vmem_limit_bytes=vmem_limit),
        cost_estimate=cost,
    )(x2d, w2d, b2d)

    return out2d.reshape(B, S, n_hidden)  # free reshape, exact shape, no slice


def reference_mlp(x, weight, bias, identity=False):
    y = jnp.einsum("bsi,hi->bsh", x, weight,
                   preferred_element_type=jnp.float32) + bias
    if not identity:
        y = jnp.where(y >= 0, y, 0.1 * y)
    return y.astype(x.dtype)


if __name__ == "__main__":
    key = jax.random.PRNGKey(0)
    k_x, k_w, k_x2, k_w2, k_b2 = jax.random.split(key, 5)

    # Small shapes consistent with the module: (B, S, n_in) -> (B, S, n_hidden)
    B, S, n_in, n_hidden = 2, 8, 32, 32

    # Deterministic parameter init mirroring reset_parameters():
    #   nn.init.orthogonal_(weight), nn.init.zeros_(bias)
    weight = jax.nn.initializers.orthogonal()(k_w, (n_hidden, n_in), jnp.float32)
    bias = jnp.zeros((n_hidden,), jnp.float32)
    x = jax.random.normal(k_x, (B, S, n_in), jnp.float32)

    ref = reference_mlp(x, weight, bias, identity=False)

    # Default path: full-precision parity with the f32 PyTorch module.
    out = jax.block_until_ready(mlp_forward(x, weight, bias, identity=False))
    assert out.shape == (B, S, n_hidden)
    assert jnp.allclose(out, ref, atol=1e-5, rtol=1e-5)

    # Opt-in bf16 MXU fast path (f32 accumulation).
    out_bf16 = jax.block_until_ready(
        mlp_forward(x, weight, bias, identity=False, compute_dtype=jnp.bfloat16))
    assert jnp.allclose(out_bf16, ref, atol=3e-2, rtol=3e-2)

    # identity=True path (no activation).
    out_id = jax.block_until_ready(mlp_forward(x, weight, bias, identity=True))
    assert jnp.allclose(out_id, reference_mlp(x, weight, bias, identity=True),
                        atol=1e-5, rtol=1e-5)

    # Ragged / unaligned shapes: exercises full-extent K/N blocks, ragged M
    # tiles (masked boundary stores) and a non-zero bias.
    B2, S2, n_in2, n_hid2 = 3, 7, 40, 24
    w2 = jax.nn.initializers.orthogonal()(k_w2, (n_hid2, n_in2), jnp.float32)
    b2 = 0.1 * jax.random.normal(k_b2, (n_hid2,), jnp.float32)
    x2 = jax.random.normal(k_x2, (B2, S2, n_in2), jnp.float32)
    out2 = jax.block_until_ready(mlp_forward(x2, w2, b2, identity=False))
    assert out2.shape == (B2, S2, n_hid2)
    assert jnp.allclose(out2, reference_mlp(x2, w2, b2), atol=1e-5, rtol=1e-5)

    print("KERNEL_OK")
</pallas_src>

<mosaic_0001>
module attributes {stable_mosaic.version = 11 : i64} {
  func.func @_mlp_kernel(%arg0: i32, %arg1: i32, %arg2: memref<16x32xf32, #tpu.memory_space<vmem>>, %arg3: memref<32x32xf32, #tpu.memory_space<vmem>>, %arg4: memref<1x32xf32, #tpu.memory_space<vmem>>, %arg5: memref<16x32xf32, #tpu.memory_space<vmem>>) attributes {dimension_semantics = [#tpu.dimension_semantics<parallel>, #tpu.dimension_semantics<parallel>], iteration_bounds = array<i64: 1, 1>, scalar_prefetch = 0 : i64, scratch_operands = 0 : i64, tpu.core_type = #tpu.core_type<tc>, window_params = [{transform_indices = @transform_0, window_bounds = array<i64: 16, 32>}, {transform_indices = @transform_1, window_bounds = array<i64: 32, 32>}, {transform_indices = @transform_2, window_bounds = array<i64: 1, 32>}, {transform_indices = @transform_3, window_bounds = array<i64: 16, 32>}]} {
    %c0 = arith.constant 0 : index
    %c0_0 = arith.constant 0 : index
    %0 = vector.load %arg2[%c0, %c0_0] : memref<16x32xf32, #tpu.memory_space<vmem>>, vector<16x32xf32>
    %c0_1 = arith.constant 0 : index
    %c0_2 = arith.constant 0 : index
    %1 = vector.load %arg3[%c0_1, %c0_2] : memref<32x32xf32, #tpu.memory_space<vmem>>, vector<32x32xf32>
    %cst = arith.constant dense<0.000000e+00> : vector<16x32xf32>
    %2 = tpu.matmul %0, %1, %cst {dimension_numbers = #tpu.dot_dimension_numbers<[1], [0], [0], [1], [0, 0, 1, 1], [], []>} : vector<16x32xf32>, vector<32x32xf32>, vector<16x32xf32> -> vector<16x32xf32>
    %c0_3 = arith.constant 0 : index
    %c0_4 = arith.constant 0 : index
    %3 = vector.load %arg4[%c0_3, %c0_4] : memref<1x32xf32, #tpu.memory_space<vmem>>, vector<1x32xf32>
    %4 = vector.broadcast %3 : vector<1x32xf32> to vector<16x32xf32>
    %5 = arith.addf %2, %4 : vector<16x32xf32>
    %cst_5 = arith.constant 0.000000e+00 : f32
    %6 = vector.broadcast %cst_5 : f32 to vector<16x32xf32>
    %7 = arith.cmpf oge, %5, %6 : vector<16x32xf32>
    %cst_6 = arith.constant 1.000000e-01 : f32
    %8 = vector.broadcast %cst_6 : f32 to vector<16x32xf32>
    %9 = arith.mulf %8, %5 : vector<16x32xf32>
    %10 = arith.select %7, %5, %9 : vector<16x32xi1>, vector<16x32xf32>
    %c0_7 = arith.constant 0 : index
    %c0_8 = arith.constant 0 : index
    %11 = vector.load %arg5[%c0_7, %c0_8] : memref<16x32xf32, #tpu.memory_space<vmem>>, vector<16x32xf32>
    tpu.vector_store %arg5[%c0_7, %c0_8], %10 {strides = array<i32>} : memref<16x32xf32, #tpu.memory_space<vmem>>, vector<16x32xf32>,
    return
  }
  func.func @transform_0(%arg0: i32, %arg1: i32) -> (i32, i32) {
    %c0_i32 = arith.constant 0 : i32
    %c0_i32_0 = arith.constant 0 : i32
    return %arg0, %c0_i32 : i32, i32
  }
  func.func @transform_1(%arg0: i32, %arg1: i32) -> (i32, i32) {
    %c0_i32 = arith.constant 0 : i32
    %c0_i32_0 = arith.constant 0 : i32
    return %c0_i32, %arg1 : i32, i32
  }
  func.func @transform_2(%arg0: i32, %arg1: i32) -> (i32, i32) {
    %c0_i32 = arith.constant 0 : i32
    %c0_i32_0 = arith.constant 0 : i32
    return %c0_i32, %arg1 : i32, i32
  }
  func.func @transform_3(%arg0: i32, %arg1: i32) -> (i32, i32) {
    %c0_i32 = arith.constant 0 : i32
    return %arg0, %arg1 : i32, i32
  }
}

</mosaic_0001>

<bundles_post_ra>
// kernel: tpu_custom_call.1
= control target key start
LH: loop header
LB: loop body
LE: loop exit
PB: predicated region body
PF: predicated region fallthrough
CT: control target
= control target key end

     0   :  { %8 = vsyncpa [#allocation3], 0  ;;  %s305_s0 = inlined_call_operand.hbm [shape: f32[16,32], index: 0, kind: input, shape index: {}]   ;;  %s306_s1 = inlined_call_operand.hbm [shape: f32[32,32], index: 1, kind: input, shape index: {}]   ;;  %s307_s2 = inlined_call_operand.vmem [shape: f32[1,32], index: 2, kind: input, shape index: {}]   ;;  %s308_s3 = inlined_call_operand.hbm [shape: f32[16,32], index: 3, kind: output, shape index: {}]  }
   0x1   :  { %9 = vsyncpa [#allocation6], 0 }
   0x2   :  { %10 = vsyncpa [#allocation4], 0  ;;  %s255_s12 = smov [#allocation2]  }
   0x3   :  { %s16_s13 = sshll.u32 %s255_s12, 4  ;;  %s17_s13 = int_to_ptr.vmem [resolvable:$true] %s16_s13 }
   0x4   :  { %s197_s14 = scalar_lea.vmem %s17_s13, 256  ;;  %p202_p1 = scmp.lt.s32.totalorder %s17_s13, %s17_s13 }
   0x5   :  { %p198_p0 = scmp.ne.s32.totalorder %s17_s13, %s197_s14  ;;  %p203_p2 = scmp.lt.s32.totalorder %s197_s14, %s197_s14 }
   0x7   :  { %p204_p3 = por %p203_p2, %p202_p1 }
   0x9   :  { %p205_p4 = pnand %p204_p3, %p198_p0 }
   0xb   :  { %208 = shalt.err (!%p205_p4)
}
   0xc   :  { %s256_s15 = smov 128   ;;  %s257_s16 = smov 8  }
   0xd   :  { %22 = dma.hbm_to_vmem [thread:$0]  %s305_s0, 256, %s17_s13, [#allocation3], %s256_s15, %s256_s15, %s257_s16  }
   0xe   :  { %s258_s19 = smov [#allocation5]  }
   0xf   :  { %s28_s20 = sshll.u32 %s258_s19, 4  ;;  %s29_s20 = int_to_ptr.vmem [resolvable:$true] %s28_s20 }
  0x10   :  { %s217_s21 = scalar_lea.vmem %s29_s20, 512  ;;  %p222_p6 = scmp.lt.s32.totalorder %s29_s20, %s29_s20 }
  0x11   :  { %p218_p5 = scmp.ne.s32.totalorder %s29_s20, %s217_s21  ;;  %p223_p7 = scmp.lt.s32.totalorder %s217_s21, %s217_s21 }
  0x13   :  { %p224_p8 = por %p223_p7, %p222_p6 }
  0x15   :  { %p225_p9 = pnand %p224_p8, %p218_p5 }
  0x17   :  { %228 = shalt.err (!%p225_p9)
}
  0x18   :  { %34 = dma.hbm_to_vmem [thread:$0]  %s306_s1, 512, %s29_s20, [#allocation6], %s256_s15, %s256_s15, %s257_s16  }
  0x19   :  { %249 = dma.done.wait [#allocation3], 256  }
  0x1a   :  { %250 = vsyncadd [#allocation3], 4294967040 }
  0x1b   :  { %251 = dma.done.wait [#allocation6], 512  }
  0x1c   :  { %252 = vsyncadd [#allocation6], 4294966784  ;;  %vm56_vm0 = vcmask 261120   ;;  %v48_v0 = vld [vmem:[#allocation5 + $0x18] sm:$0xff]  ;;  %v47_v1 = vld [vmem:[#allocation5 + $0x10] sm:$0xff]  ;;  %s259_s24 = smov [#allocation7]  }
  0x1d   :  { %173 = vmatprep.subr.mxu0 %v48_v0  ;;  %v43_v2 = vld [vmem:[#allocation2] sm:$0xff]  ;;  %v46_v3 = vld [vmem:[#allocation5 + $0x8] sm:$0xff]  ;;  %v45_v4 = vld [vmem:[#allocation5] sm:$0xff]  ;;  %s151_s25 = sshll.u32 %s259_s24, 4  ;;  %s152_s25 = int_to_ptr.vmem [resolvable:$true] %s151_s25 }
  0x1e   :  { %174 = vmatpush3.msra.mxu0 %v48_v0  ;;  %181 = vmatprep.mubr.msk.f32.mxu0 %vm56_vm0, %v43_v2  ;;  %v44_v5 = vld [vmem:[#allocation2 + $0x8] sm:$0xff]  ;;  %v164_v6 = vld [vmem:[%s307_s2] ss:$0 sm:$0xff]  ;;  %s229_s26 = scalar_lea.vmem %s152_s25, 256  ;;  %p234_p11 = scmp.lt.s32.totalorder %s152_s25, %s152_s25 }
  0x1f   :  { %175 = vmatprep.subr.mxu0 %v47_v1  ;;  %p230_p10 = scmp.ne.s32.totalorder %s152_s25, %s229_s26  ;;  %p235_p12 = scmp.lt.s32.totalorder %s229_s26, %s229_s26 }
  0x20   :  { %176 = vmatpush3.msra.mxu0 %v47_v1 }
  0x21   :  { %177 = vmatprep.subr.mxu0 %v46_v3  ;;  %p236_p13 = por %p235_p12, %p234_p11 }
  0x22   :  { %178 = vmatpush3.msra.mxu0 %v46_v3 }
  0x23   :  { %179 = vmatprep.subr.mxu0 %v45_v4  ;;  %p237_p0 = pnand %p236_p13, %p230_p10 }
  0x24   :  { %180 = vmatpush3.msra.mxu0 %v45_v4 }
  0x25   :  { %182 = vmatmul.mubr.msk.f32.vlgmr.msra.gmra.mxu0 %vm56_vm0, %v44_v5 }
  0xe5   :  { %v183_v7 = vpop.f32.mrf.mxu0 }
  0xe6   :  { %v135_v8 = vadd.f32 %v183_v7, %v164_v6 }
  0xe7   :  { %v129_v9 = vpop.f32.mrf.mxu0 }
  0xe8   :  { %vm139_vm1 = vcmp.ge.f32.partialorder %v135_v8, 0.0  ;;  %v141_v10 = vmul.f32 0.1, %v135_v8  ;;  %v130_v11 = vadd.f32 %v164_v6, %v129_v9 }
  0xea   :  { %v143_v12 = vsel %vm139_vm1, %v135_v8, %v141_v10  ;;  %vm138_vm2 = vcmp.ge.f32.partialorder %v130_v11, 0.0  ;;  %v140_v13 = vmul.f32 0.1, %v130_v11 }
  0xeb   :  { %145 = vst.msk [vmem:[#allocation7 + $0x8] sm:$0xff] %vm56_vm0, %v143_v12 }
  0xec   :  { %v142_v14 = vsel %vm138_vm2, %v130_v11, %v140_v13 }
  0xed   :  { %144 = vst.msk [vmem:[#allocation7] sm:$0xff] %vm56_vm0, %v142_v14 }
  0xee   :  { %240 = shalt.err (!%p237_p0)
}
  0xef   :  { %157 = dma.vmem_to_hbm [thread:$0]  %s152_s25, 256, %s308_s3, [#allocation4], %s256_s15, %s256_s15, %s257_s16  }
  0xf0   :  { %253 = dma.done.wait [#allocation4], 256  }
  0xf1   :  { %254 = vsyncadd [#allocation4], 4294967040 }
  0xf2   :  { %161 = vsyncpa [#allocation3], 1 }
  0xf3   :  { %162 = vsyncpa [#allocation6], 1 }
  0xf4   :  { %163 = vsyncpa [#allocation4], 1 }

</bundles_post_ra>
